<compile_context>
chip_gen: v7x
topology: tpu7x:2x2x1
jax: 0.10.0
libtpu: 0.0.40
codegen_flags: <defaults>
</compile_context>

<pallas_src>
import functools
import math

import jax
import jax.numpy as jnp
from jax import lax
from jax.experimental import pallas as pl
from jax.experimental.pallas import tpu as pltpu

_LANES = 128
# Large finite negative instead of -inf: exp() still flushes to exactly 0 but
# an (unexpected) all-masked tile cannot produce exp(-inf - -inf) = NaN.
_NEG_BIG = float(jnp.finfo(jnp.float32).min) / 2


def _round_up(x, m):
    return (x + m - 1) // m * m


def _lane_expand(x, n):
    """Expand a lane-replicated (rows, _LANES) array to (rows, n)."""
    rows, lanes = x.shape
    if n == lanes:
        return x
    if n % lanes == 0:
        return jnp.tile(x, (1, n // lanes))
    return jnp.broadcast_to(x[:, :1], (rows, n))


def _flash_attn_kernel(q_ref, k_ref, v_ref, o_ref, qs_sc, m_sc, l_sc, acc_sc,
                       *, scale, tk, lk_valid, mask_keys, mm_dtype):
    k_idx = pl.program_id(2)
    last_k = pl.num_programs(2) - 1

    @pl.when(k_idx == 0)
    def _init():
        m_sc[...] = jnp.full_like(m_sc, _NEG_BIG)
        l_sc[...] = jnp.zeros_like(l_sc)
        acc_sc[...] = jnp.zeros_like(acc_sc)
        # q is invariant along the key axis: scale + cast once per q tile and
        # reuse from VMEM scratch for every k tile (removes per-step VALU work).
        qs_sc[...] = (q_ref[0].astype(jnp.float32) * scale).astype(qs_sc.dtype)

    def step(masked):
        q = qs_sc[...]                             # (tq, D)  mm_dtype
        k = k_ref[0].astype(mm_dtype)              # (tk, D)
        v = v_ref[0].astype(mm_dtype)              # (tk, Dv)

        # scores = q @ k^T — contract last dims of both operands (no transpose).
        s = lax.dot_general(q, k, dimension_numbers=(((1,), (1,)), ((), ())),
                            preferred_element_type=jnp.float32)   # (tq, tk)

        if masked:
            col = k_idx * tk + lax.broadcasted_iota(jnp.int32, s.shape, 1)
            s = jnp.where(col < lk_valid, s, _NEG_BIG)

        # Online (flash) softmax update; m/l are lane-replicated (tq, 128).
        m_prev = m_sc[...]
        row_max = jnp.max(s, axis=-1, keepdims=True)               # (tq, 1)
        m_new = jnp.maximum(m_prev, row_max)                       # (tq, 128)
        alpha = jnp.exp(m_prev - m_new)                            # (tq, 128)
        p = jnp.exp(s - _lane_expand(m_new, s.shape[-1]))          # (tq, tk)

        l_sc[...] = alpha * l_sc[...] + jnp.sum(p, axis=-1, keepdims=True)
        acc_sc[...] = (_lane_expand(alpha, acc_sc.shape[-1]) * acc_sc[...]
                       + jnp.dot(p.astype(mm_dtype), v,
                                 preferred_element_type=jnp.float32))
        m_sc[...] = m_new

    if mask_keys:
        # Only the LAST key tile can contain padding: pay the iota/compare/
        # select mask cost only there.
        @pl.when(k_idx == last_k)
        def _masked():
            step(masked=True)

        @pl.when(k_idx != last_k)
        def _unmasked():
            step(masked=False)
    else:
        step(masked=False)

    @pl.when(k_idx == last_k)
    def _finalize():
        inv_l = pl.reciprocal(l_sc[...], approx=False)   # exact, once per tile
        o_ref[0] = (acc_sc[...]
                    * _lane_expand(inv_l, acc_sc.shape[-1])).astype(o_ref.dtype)


def dot_product_attention(query, keys, values, input_dim, *,
                          tq=512, tk=1024, matmul_dtype=jnp.bfloat16):
    """Pallas TPU equivalent of DotProductAttention.forward."""
    B, Lq, D = query.shape
    Bk, Lk, Dk = keys.shape
    Bv, Lkv, Dv = values.shape
    assert D == Dk and Lk == Lkv and B == Bk == Bv

    # Clip tiles to the (8-aligned) problem size.
    tq = min(tq, _round_up(Lq, 8))
    tk = min(tk, _round_up(Lk, 8))
    # Megacore balance: keep at least 2 parallel grid points (B * q tiles) so
    # both TensorCores on v7x get work.
    while tq > 128 and B * pl.cdiv(Lq, tq) < 2:
        tq //= 2

    lq_pad = _round_up(Lq, tq)
    lk_pad = _round_up(Lk, tk)

    if lq_pad != Lq:
        query = jnp.pad(query, ((0, 0), (0, lq_pad - Lq), (0, 0)))
    if lk_pad != Lk:
        keys = jnp.pad(keys, ((0, 0), (0, lk_pad - Lk), (0, 0)))
        values = jnp.pad(values, ((0, 0), (0, lk_pad - Lk), (0, 0)))

    mm_dtype = (jnp.dtype(matmul_dtype) if matmul_dtype is not None
                else query.dtype)

    # Matches torch.sqrt(torch.tensor(input_dim, dtype=torch.float32)).
    scale = 1.0 / math.sqrt(float(input_dim))

    kernel = functools.partial(
        _flash_attn_kernel, scale=scale, tk=tk, lk_valid=Lk,
        mask_keys=(lk_pad != Lk), mm_dtype=mm_dtype)

    grid = (B, lq_pad // tq, lk_pad // tk)
    num_q_tiles = lq_pad // tq
    itemsize = query.dtype.itemsize
    cost = pl.CostEstimate(
        flops=int(2 * B * lq_pad * lk_pad * (D + Dv)),
        transcendentals=int(B * lq_pad * lk_pad),
        # K/V are re-streamed once per q tile.
        bytes_accessed=int((int(query.size)
                            + num_q_tiles * (int(keys.size) + int(values.size))
                            + B * lq_pad * Dv) * itemsize))

    out = pl.pallas_call(
        kernel,
        out_shape=jax.ShapeDtypeStruct((B, lq_pad, Dv), query.dtype),
        grid_spec=pltpu.PrefetchScalarGridSpec(
            num_scalar_prefetch=0,
            grid=grid,
            in_specs=[
                pl.BlockSpec((1, tq, D), lambda b, qi, ki: (b, qi, 0)),
                pl.BlockSpec((1, tk, D), lambda b, qi, ki: (b, ki, 0)),
                pl.BlockSpec((1, tk, Dv), lambda b, qi, ki: (b, ki, 0)),
            ],
            # Same output block across the Lk axis -> accumulator resident.
            out_specs=pl.BlockSpec((1, tq, Dv), lambda b, qi, ki: (b, qi, 0)),
            scratch_shapes=[
                pltpu.VMEM((tq, D), mm_dtype),           # pre-scaled q (cached)
                pltpu.VMEM((tq, _LANES), jnp.float32),   # running max m
                pltpu.VMEM((tq, _LANES), jnp.float32),   # running sum l
                pltpu.VMEM((tq, Dv), jnp.float32),       # output accumulator
            ]),
        compiler_params=pltpu.CompilerParams(
            dimension_semantics=("parallel", "parallel", "arbitrary"),
            vmem_limit_bytes=48 * 1024 * 1024),
        cost_estimate=cost,
    )(query, keys, values)

    if lq_pad != Lq:
        out = out[:, :Lq, :]
    return out


def _reference(query, keys, values, input_dim):
    scores = jnp.matmul(query, jnp.swapaxes(keys, -1, -2)) / jnp.sqrt(
        jnp.float32(input_dim))
    w = jax.nn.softmax(scores, axis=-1)
    return jnp.matmul(w, values)


if __name__ == "__main__":
    key = jax.random.PRNGKey(0)
    kq, kk, kv = jax.random.split(key, 3)

    # Case 1: small, tile-aligned shapes.
    B, Lq, Lk, D, Dv = 2, 8, 8, 32, 32
    q = jax.random.normal(kq, (B, Lq, D), dtype=jnp.float32)
    k = jax.random.normal(kk, (B, Lk, D), dtype=jnp.float32)
    v = jax.random.normal(kv, (B, Lk, Dv), dtype=jnp.float32)
    out = jax.block_until_ready(dot_product_attention(q, k, v, D))
    ref = _reference(q, k, v, D)
    assert out.shape == ref.shape
    # Tolerance accounts for the bf16 MXU operands (f32 accumulation).
    assert jnp.allclose(out, ref, atol=2e-2, rtol=2e-2), float(
        jnp.max(jnp.abs(out - ref)))

    # Case 2: ragged key length -> exercises padding + last-tile key masking.
    Lk2 = 12
    k2 = jax.random.normal(kk, (B, Lk2, D), dtype=jnp.float32)
    v2 = jax.random.normal(kv, (B, Lk2, Dv), dtype=jnp.float32)
    out2 = jax.block_until_ready(dot_product_attention(q, k2, v2, D))
    ref2 = _reference(q, k2, v2, D)
    assert out2.shape == ref2.shape
    assert jnp.allclose(out2, ref2, atol=2e-2, rtol=2e-2), float(
        jnp.max(jnp.abs(out2 - ref2)))

    print("KERNEL_OK")
</pallas_src>

<mosaic_0001>
module attributes {stable_mosaic.version = 11 : i64} {
  func.func @_flash_attn_kernel(%arg0: i32, %arg1: i32, %arg2: i32, %arg3: memref<1x8x32xf32, #tpu.memory_space<vmem>>, %arg4: memref<1x8x32xf32, #tpu.memory_space<vmem>>, %arg5: memref<1x8x32xf32, #tpu.memory_space<vmem>>, %arg6: memref<1x8x32xf32, #tpu.memory_space<vmem>>, %arg7: memref<8x32xbf16, #tpu.memory_space<vmem>>, %arg8: memref<8x128xf32, #tpu.memory_space<vmem>>, %arg9: memref<8x128xf32, #tpu.memory_space<vmem>>, %arg10: memref<8x32xf32, #tpu.memory_space<vmem>>) attributes {dimension_semantics = [#tpu.dimension_semantics<parallel>, #tpu.dimension_semantics<parallel>, #tpu.dimension_semantics<arbitrary>], iteration_bounds = array<i64: 2, 1, 1>, scalar_prefetch = 0 : i64, scratch_operands = 4 : i64, tpu.core_type = #tpu.core_type<tc>, window_params = [{transform_indices = @transform_0, window_bounds = array<i64: 1, 8, 32>}, {transform_indices = @transform_1, window_bounds = array<i64: 1, 8, 32>}, {transform_indices = @transform_2, window_bounds = array<i64: 1, 8, 32>}, {transform_indices = @transform_3, window_bounds = array<i64: 1, 8, 32>}]} {
    %c0_i32 = arith.constant 0 : i32
    %0 = arith.cmpi eq, %arg2, %c0_i32 : i32
    %1 = arith.extui %0 : i1 to i32
    %c0_i32_0 = arith.constant 0 : i32
    %2 = arith.cmpi ne, %1, %c0_i32_0 : i32
    scf.if %2 {
      %cst_25 = arith.constant -1.70141173E+38 : f32
      %43 = vector.broadcast %cst_25 : f32 to vector<8x128xf32>
      %c0_26 = arith.constant 0 : index
      %c0_27 = arith.constant 0 : index
      %44 = vector.load %arg8[%c0_26, %c0_27] : memref<8x128xf32, #tpu.memory_space<vmem>>, vector<8x128xf32>
      tpu.vector_store %arg8[%c0_26, %c0_27], %43 {strides = array<i32>} : memref<8x128xf32, #tpu.memory_space<vmem>>, vector<8x128xf32>,
      %cst_28 = arith.constant 0.000000e+00 : f32
      %45 = vector.broadcast %cst_28 : f32 to vector<8x128xf32>
      %c0_29 = arith.constant 0 : index
      %c0_30 = arith.constant 0 : index
      %46 = vector.load %arg9[%c0_29, %c0_30] : memref<8x128xf32, #tpu.memory_space<vmem>>, vector<8x128xf32>
      tpu.vector_store %arg9[%c0_29, %c0_30], %45 {strides = array<i32>} : memref<8x128xf32, #tpu.memory_space<vmem>>, vector<8x128xf32>,
      %cst_31 = arith.constant 0.000000e+00 : f32
      %47 = vector.broadcast %cst_31 : f32 to vector<8x32xf32>
      %c0_32 = arith.constant 0 : index
      %c0_33 = arith.constant 0 : index
      %48 = vector.load %arg10[%c0_32, %c0_33] : memref<8x32xf32, #tpu.memory_space<vmem>>, vector<8x32xf32>
      tpu.vector_store %arg10[%c0_32, %c0_33], %47 {strides = array<i32>} : memref<8x32xf32, #tpu.memory_space<vmem>>, vector<8x32xf32>,
      %c0_34 = arith.constant 0 : index
      %c0_35 = arith.constant 0 : index
      %c0_36 = arith.constant 0 : index
      %49 = vector.load %arg3[%c0_34, %c0_35, %c0_36] : memref<1x8x32xf32, #tpu.memory_space<vmem>>, vector<1x8x32xf32>
      %50 = vector.shape_cast %49 : vector<1x8x32xf32> to vector<8x32xf32>
      %cst_37 = arith.constant 0.176776692 : f32
      %51 = vector.broadcast %cst_37 : f32 to vector<8x32xf32>
      %52 = arith.mulf %50, %51 : vector<8x32xf32>
      %53 = arith.truncf %52 : vector<8x32xf32> to vector<8x32xbf16>
      %c0_38 = arith.constant 0 : index
      %c0_39 = arith.constant 0 : index
      %54 = vector.load %arg7[%c0_38, %c0_39] : memref<8x32xbf16, #tpu.memory_space<vmem>>, vector<8x32xbf16>
      tpu.vector_store %arg7[%c0_38, %c0_39], %53 {strides = array<i32>} : memref<8x32xbf16, #tpu.memory_space<vmem>>, vector<8x32xbf16>,
    } else {
    }
    %c0 = arith.constant 0 : index
    %c0_1 = arith.constant 0 : index
    %3 = vector.load %arg7[%c0, %c0_1] : memref<8x32xbf16, #tpu.memory_space<vmem>>, vector<8x32xbf16>
    %c0_2 = arith.constant 0 : index
    %c0_3 = arith.constant 0 : index
    %c0_4 = arith.constant 0 : index
    %4 = vector.load %arg4[%c0_2, %c0_3, %c0_4] : memref<1x8x32xf32, #tpu.memory_space<vmem>>, vector<1x8x32xf32>
    %5 = vector.shape_cast %4 : vector<1x8x32xf32> to vector<8x32xf32>
    %6 = arith.truncf %5 : vector<8x32xf32> to vector<8x32xbf16>
    %c0_5 = arith.constant 0 : index
    %c0_6 = arith.constant 0 : index
    %c0_7 = arith.constant 0 : index
    %7 = vector.load %arg5[%c0_5, %c0_6, %c0_7] : memref<1x8x32xf32, #tpu.memory_space<vmem>>, vector<1x8x32xf32>
    %8 = vector.shape_cast %7 : vector<1x8x32xf32> to vector<8x32xf32>
    %9 = arith.truncf %8 : vector<8x32xf32> to vector<8x32xbf16>
    %cst = arith.constant dense<0.000000e+00> : vector<8x8xf32>
    %10 = tpu.matmul %3, %6, %cst {dimension_numbers = #tpu.dot_dimension_numbers<[1], [1], [0], [0], [0, 0, 1, 0], [], []>} : vector<8x32xbf16>, vector<8x32xbf16>, vector<8x8xf32> -> vector<8x8xf32>
    %c0_8 = arith.constant 0 : index
    %c0_9 = arith.constant 0 : index
    %11 = vector.load %arg8[%c0_8, %c0_9] : memref<8x128xf32, #tpu.memory_space<vmem>>, vector<8x128xf32>
    %cst_10 = arith.constant dense<0xFF800000> : vector<8xf32>
    %12 = vector.multi_reduction <maximumf>, %10, %cst_10 [1] : vector<8x8xf32> to vector<8xf32>
    %13 = vector.shape_cast %12 : vector<8xf32> to vector<8x1xf32>
    %14 = vector.broadcast %13 : vector<8x1xf32> to vector<8x128xf32>
    %15 = arith.maximumf %11, %14 : vector<8x128xf32>
    %16 = arith.subf %11, %15 : vector<8x128xf32>
    %17 = math.exp %16 : vector<8x128xf32>
    %18 = vector.extract_strided_slice %15 {offsets = [0, 0], sizes = [8, 1], strides = [1, 1]} : vector<8x128xf32> to vector<8x1xf32>
    %19 = vector.shape_cast %18 : vector<8x1xf32> to vector<8x1xf32>
    %20 = vector.broadcast %19 : vector<8x1xf32> to vector<8x8xf32>
    %21 = arith.subf %10, %20 : vector<8x8xf32>
    %22 = math.exp %21 : vector<8x8xf32>
    %c0_11 = arith.constant 0 : index
    %c0_12 = arith.constant 0 : index
    %23 = vector.load %arg9[%c0_11, %c0_12] : memref<8x128xf32, #tpu.memory_space<vmem>>, vector<8x128xf32>
    %24 = arith.mulf %17, %23 : vector<8x128xf32>
    %cst_13 = arith.constant dense<0.000000e+00> : vector<8xf32>
    %25 = vector.multi_reduction <add>, %22, %cst_13 [1] : vector<8x8xf32> to vector<8xf32>
    %26 = vector.shape_cast %25 : vector<8xf32> to vector<8x1xf32>
    %27 = vector.broadcast %26 : vector<8x1xf32> to vector<8x128xf32>
    %28 = arith.addf %24, %27 : vector<8x128xf32>
    %c0_14 = arith.constant 0 : index
    %c0_15 = arith.constant 0 : index
    %29 = vector.load %arg9[%c0_14, %c0_15] : memref<8x128xf32, #tpu.memory_space<vmem>>, vector<8x128xf32>
    tpu.vector_store %arg9[%c0_14, %c0_15], %28 {strides = array<i32>} : memref<8x128xf32, #tpu.memory_space<vmem>>, vector<8x128xf32>,
    %30 = vector.extract_strided_slice %17 {offsets = [0, 0], sizes = [8, 1], strides = [1, 1]} : vector<8x128xf32> to vector<8x1xf32>
    %31 = vector.shape_cast %30 : vector<8x1xf32> to vector<8x1xf32>
    %32 = vector.broadcast %31 : vector<8x1xf32> to vector<8x32xf32>
    %c0_16 = arith.constant 0 : index
    %c0_17 = arith.constant 0 : index
    %33 = vector.load %arg10[%c0_16, %c0_17] : memref<8x32xf32, #tpu.memory_space<vmem>>, vector<8x32xf32>
    %34 = arith.mulf %32, %33 : vector<8x32xf32>
    %35 = arith.truncf %22 : vector<8x8xf32> to vector<8x8xbf16>
    %cst_18 = arith.constant dense<0.000000e+00> : vector<8x32xf32>
    %36 = tpu.matmul %35, %9, %cst_18 {dimension_numbers = #tpu.dot_dimension_numbers<[1], [0], [0], [1], [0, 0, 1, 1], [], []>} : vector<8x8xbf16>, vector<8x32xbf16>, vector<8x32xf32> -> vector<8x32xf32>
    %37 = arith.addf %34, %36 : vector<8x32xf32>
    %c0_19 = arith.constant 0 : index
    %c0_20 = arith.constant 0 : index
    %38 = vector.load %arg10[%c0_19, %c0_20] : memref<8x32xf32, #tpu.memory_space<vmem>>, vector<8x32xf32>
    tpu.vector_store %arg10[%c0_19, %c0_20], %37 {strides = array<i32>} : memref<8x32xf32, #tpu.memory_space<vmem>>, vector<8x32xf32>,
    %c0_21 = arith.constant 0 : index
    %c0_22 = arith.constant 0 : index
    %39 = vector.load %arg8[%c0_21, %c0_22] : memref<8x128xf32, #tpu.memory_space<vmem>>, vector<8x128xf32>
    tpu.vector_store %arg8[%c0_21, %c0_22], %15 {strides = array<i32>} : memref<8x128xf32, #tpu.memory_space<vmem>>, vector<8x128xf32>,
    %c0_i32_23 = arith.constant 0 : i32
    %40 = arith.cmpi eq, %arg2, %c0_i32_23 : i32
    %41 = arith.extui %40 : i1 to i32
    %c0_i32_24 = arith.constant 0 : i32
    %42 = arith.cmpi ne, %41, %c0_i32_24 : i32
    scf.if %42 {
      %c0_25 = arith.constant 0 : index
      %c0_26 = arith.constant 0 : index
      %43 = vector.load %arg9[%c0_25, %c0_26] : memref<8x128xf32, #tpu.memory_space<vmem>>, vector<8x128xf32>
      %44 = tpu.reciprocal %43 : vector<8x128xf32> -> vector<8x128xf32>
      %c0_27 = arith.constant 0 : index
      %c0_28 = arith.constant 0 : index
      %45 = vector.load %arg10[%c0_27, %c0_28] : memref<8x32xf32, #tpu.memory_space<vmem>>, vector<8x32xf32>
      %46 = vector.extract_strided_slice %44 {offsets = [0, 0], sizes = [8, 1], strides = [1, 1]} : vector<8x128xf32> to vector<8x1xf32>
      %47 = vector.shape_cast %46 : vector<8x1xf32> to vector<8x1xf32>
      %48 = vector.broadcast %47 : vector<8x1xf32> to vector<8x32xf32>
      %49 = arith.mulf %45, %48 : vector<8x32xf32>
      %c0_29 = arith.constant 0 : index
      %c0_30 = arith.constant 0 : index
      %c0_31 = arith.constant 0 : index
      %50 = vector.load %arg6[%c0_29, %c0_30, %c0_31] : memref<1x8x32xf32, #tpu.memory_space<vmem>>, vector<1x8x32xf32>
      %51 = vector.shape_cast %50 : vector<1x8x32xf32> to vector<8x32xf32>
      %52 = vector.shape_cast %49 : vector<8x32xf32> to vector<1x8x32xf32>
      tpu.vector_store %arg6[%c0_29, %c0_30, %c0_31], %52 {strides = array<i32>} : memref<1x8x32xf32, #tpu.memory_space<vmem>>, vector<1x8x32xf32>,
    } else {
    }
    return
  }
  func.func @transform_0(%arg0: i32, %arg1: i32, %arg2: i32) -> (i32, i32, i32) {
    %c0_i32 = arith.constant 0 : i32
    %c0_i32_0 = arith.constant 0 : i32
    return %arg0, %arg1, %c0_i32 : i32, i32, i32
  }
  func.func @transform_1(%arg0: i32, %arg1: i32, %arg2: i32) -> (i32, i32, i32) {
    %c0_i32 = arith.constant 0 : i32
    %c0_i32_0 = arith.constant 0 : i32
    return %arg0, %arg2, %c0_i32 : i32, i32, i32
  }
  func.func @transform_2(%arg0: i32, %arg1: i32, %arg2: i32) -> (i32, i32, i32) {
    %c0_i32 = arith.constant 0 : i32
    %c0_i32_0 = arith.constant 0 : i32
    return %arg0, %arg2, %c0_i32 : i32, i32, i32
  }
  func.func @transform_3(%arg0: i32, %arg1: i32, %arg2: i32) -> (i32, i32, i32) {
    %c0_i32 = arith.constant 0 : i32
    %c0_i32_0 = arith.constant 0 : i32
    return %arg0, %arg1, %c0_i32 : i32, i32, i32
  }
}

</mosaic_0001>

<bundles_post_ra>
// kernel: tpu_custom_call.1
= control target key start
LH: loop header
LB: loop body
LE: loop exit
PB: predicated region body
PF: predicated region fallthrough
CT: control target
= control target key end

     0   :  { %s1188_s0 = inlined_call_operand.hbm [shape: f32[2,8,32], index: 0, kind: input, shape index: {}]   ;;  %s1189_s1 = inlined_call_operand.hbm [shape: f32[2,8,32], index: 1, kind: input, shape index: {}]   ;;  %s1190_s2 = inlined_call_operand.hbm [shape: f32[2,8,32], index: 2, kind: input, shape index: {}]   ;;  %s1191_s3 = inlined_call_operand.hbm [shape: f32[2,8,32], index: 3, kind: output, shape index: {}]  }
   0x1   :  { %1197 = sst [smem:[#allocation19_spill]] %s1189_s1 }
   0x2   :  { %8 = vsyncpa [#allocation7], 0 }
   0x3   :  { %10 = vsyncpa [#allocation7 + $0x1], 0 }
   0x4   :  { %11 = vsyncpa [#allocation10], 0 }
   0x5   :  { %13 = vsyncpa [#allocation10 + $0x1], 0 }
   0x6   :  { %14 = vsyncpa [#allocation8], 0 }
   0x7   :  { %16 = vsyncpa [#allocation8 + $0x1], 0  ;;  %s916_s12 = smov 0   ;;  %s918_s13 = smov 0  }
   0x8   :  { %s920_s14 = smov 0   ;;  %s922_s15 = smov 0  }
   0x9   :  { %s924_s16 = smov 0   ;;  %s926_s17 = smov 0  }
   0xa LB: > { %1198 = sst [smem:[#allocation16_spill]] %s883_s16  ;;  %s947_s18 = sadd.s32 4294967295, %s887_s17   ;;  %s887_s17 = sphi %s926_s17, %s22_s17   ;;  %s883_s16 = sphi %s924_s16, %s1219_s16   ;;  %s879_s15 = sphi %s922_s15, %s1218_s15   ;;  %s875_s14 = sphi %s920_s14, %s1222_s14   ;;  %s871_s13 = sphi %s918_s13, %s1221_s13   ;;  %s867_s12 = sphi %s916_s12, %s1220_s12  }
   0xb   : > { %s592_s19 = sadd.s32 4294967294, %s887_s17   ;;  %s41_s20 = sadd.s32 1, %s883_s16 }
   0xc   : > { %s50_s21 = sadd.s32 1, %s875_s14  ;;  %p43_p0 = scmp.ge.s32.totalorder %s41_s20, 2 }
   0xd   : > { %p57_p1 = scmp.ne.s32.totalorder %s875_s14, %s871_s13  ;;  %p58_p2 = scmp.eq.s32.totalorder %s887_s17, 0 }
   0xe   : > { %p63_p3 = scmp.ne.s32.totalorder %s871_s13, %s867_s12  ;;  %s1224_s20 = smov (%p43_p0, %s41_s20), 0 }
   0xf   : > { %1199 = sst [smem:[#allocation17_spill]] %s1224_s20  ;;  %p959_p4 = por %p58_p2, %p57_p1 }
  0x10   : > { %p64_p5 = scmp.eq.s32.totalorder %s947_s18, 0  ;;  %s45_s23 = ssub.s32 %s883_s16, %s1224_s20 }
  0x11   : > { %p145_p6 = scmp.eq.s32.totalorder %s947_s18, 1  ;;  %p48_p7 = scmp.eq.s32.totalorder %s45_s23, 0 }
  0x12   : > { %p967_p8 = por %p64_p5, %p63_p3  ;;  %p151_p10 = scmp.eq.s32.totalorder %s592_s19, 1 }
  0x13   : > { %p971_p9 = por %p145_p6, %p57_p1  ;;  %p650_p13 = scmp.lt.s32.totalorder %s887_s17, 2 }
  0x14   : > { %s1201_s24 = scalar_select %p967_p8, 1, 0 }
  0x15   : > { %s1202_s25 = scalar_select %p971_p9, 1, 0 }
  0x16   : > { %s976_s26 = scalar_select %p48_p7, %s875_s14, %s50_s21  }
  0x17   : > { %p978_p11 = por %p151_p10, %p63_p3  ;;  %s171_s28 = sand.u32 1, %s875_s14  }
  0x18   : > { %1203 = sst [smem:[#allocation18_spill]] %s976_s26  ;;  %s987_s29 = sshll.u32 %s171_s28, 3 }
  0x19   : > { %s1204_s27 = scalar_select %p978_p11, 1, 0 }
  0x1a   : > { %s990_s30 = sshll.u32 %s883_s16, 7  ;;  %p994_p0 = pnand %p650_p13, %p959_p4 }
  0x1b   : > { %s190_s5 = sand.u32 1, %s887_s17   ;;  %s1206_s1 = sld [smem:[#allocation19_spill]] }
  0x1c   : > { %s1205_s4 = scalar_select %p994_p0, 1, 0 }
  0x1d   : > { %s194_s9 = scalar_lea.vmem [#allocation9], %s987_s29  ;;  %s1010_s11 = scalar_lea.sflag [#allocation10], %s190_s5 }
  0x1e   : > { %s202_s10 = sshll.u32 %s194_s9, 4  ;;  %p1016_p4 = pneg %p994_p0  ;;  %s1007_s10 = int_to_ptr.vmem [resolvable:$true] %s202_s10 }
  0x21   : > { %s1003_s8 = scalar_lea.hbm %s1206_s1, %s990_s30  ;;  %s716_s6 = scalar_lea.hbm %s1206_s1, 256 }
  0x22   : > { %s711_s19 = scalar_lea.hbm %s1003_s8, 128  ;;  %p717_p7 = scmp.lt.u32.totalorder %s1003_s8, %s1206_s1 }
  0x23   : > { %p712_p3 = scmp.ne.s32.totalorder %s1003_s8, %s711_s19  ;;  %p718_p10 = scmp.lt.u32.totalorder %s716_s6, %s711_s19 }
  0x24   : > { %p720_p12 = scmp.lt.u32.totalorder %s711_s19, %s1003_s8 }
  0x25   : > { %p714_p5 = pnand %p1016_p4, %p712_p3  ;;  %p719_p13 = por %p718_p10, %p717_p7 }
  0x27   : > { %p715_p6 = pneg %p714_p5  ;;  %p721_p1 = por %p720_p12, %p719_p13 }
  0x29   : > { %p722_p2 = pnand %p721_p1, %p715_p6 }
  0x2b   : > { %725 = shalt.err (!%p722_p2)
}
  0x2c   : > { %s726_s5 = scalar_lea.vmem %s1007_s10, 128  ;;  %s889_s22 = smov [#allocation9]  }
  0x2d   : > { %p727_p3 = scmp.ne.s32.totalorder %s1007_s10, %s726_s5  ;;  %s731_s23 = sshll.u32 %s889_s22, 4  ;;  %s732_s23 = int_to_ptr.vmem [resolvable:$false] %s731_s23 }
  0x2e   : > { %s733_s7 = scalar_lea.vmem %s732_s23, 256  ;;  %p734_p9 = scmp.lt.s32.totalorder %s1007_s10, %s732_s23 }
  0x2f   : > { %p729_p5 = pnand %p727_p3, %p1016_p4  ;;  %p735_p8 = scmp.lt.s32.totalorder %s733_s7, %s726_s5 }
  0x31   : > { %p730_p11 = pneg %p729_p5  ;;  %p736_p7 = por %p735_p8, %p734_p9 }
  0x33   : > { %p737_p10 = pnand %p736_p7, %p730_p11 }
  0x35   : > { %740 = shalt.err (!%p737_p10)
}
  0x36   : > { %642 = dma.hbm_to_vmem [thread:$0]  (!%p994_p0), %s1003_s8, 128, %s1007_s10, %s1010_s11  }
  0x37   : > { %p1208_p12 = scmp.lt.s32.totalorder %s887_s17, 3  ;;  %p1209_p1 = scmp.ge.s32.totalorder %s887_s17, 1 }
  0x38   : > { %s1052_s5 = scalar_lea.hbm %s1188_s0, %s990_s30  ;;  %s175_s22 = scalar_lea.vmem [#allocation6], %s987_s29 }
  0x39   : > { %p1044_p2 = pnand %p1209_p1, %p1208_p12  ;;  %s183_s23 = sshll.u32 %s175_s22, 4  ;;  %s1055_s23 = int_to_ptr.vmem [resolvable:$true] %s183_s23 }
  0x3a   : > { %s1061_s7 = scalar_lea.hbm %s1190_s2, %s990_s30  ;;  %s172_s1 = scalar_lea.sflag [#allocation7], %s171_s28 }
  0x3b   : > { %s1210_s19 = scalar_select %p1044_p2, 1, 0 }
  0x3c   : > { %s741_s20 = scalar_lea.hbm %s1052_s5, 128  ;;  %s746_s16 = scalar_lea.hbm %s1188_s0, 256 }
  0x3d   : > { %p742_p8 = scmp.ne.s32.totalorder %s1052_s5, %s741_s20  ;;  %p747_p6 = scmp.lt.u32.totalorder %s1052_s5, %s1188_s0 }
  0x3e   : > { %p748_p13 = scmp.lt.u32.totalorder %s746_s16, %s741_s20  ;;  %p750_p5 = scmp.lt.u32.totalorder %s741_s20, %s1052_s5 }
  0x3f   : > { %p744_p9 = pnand %p742_p8, %p1016_p4 }
  0x40   : > { %p749_p3 = por %p748_p13, %p747_p6 }
  0x41   : > { %p745_p11 = pneg %p744_p9 }
  0x42   : > { %p751_p7 = por %p750_p5, %p749_p3 }
  0x44   : > { %p752_p10 = pnand %p751_p7, %p745_p11 }
  0x46   : > { %755 = shalt.err (!%p752_p10)
}
  0x47   : > { %s756_s28 = scalar_lea.vmem %s1055_s23, 128  ;;  %s890_s30 = smov [#allocation6]  }
  0x48   : > { %p757_p12 = scmp.ne.s32.totalorder %s1055_s23, %s756_s28  ;;  %s761_s8 = sshll.u32 %s890_s30, 4  ;;  %s762_s8 = int_to_ptr.vmem [resolvable:$false] %s761_s8 }
  0x49   : > { %s763_s26 = scalar_lea.vmem %s762_s8, 256  ;;  %p764_p9 = scmp.lt.s32.totalorder %s1055_s23, %s762_s8 }
  0x4a   : > { %p759_p1 = pnand %p757_p12, %p1016_p4  ;;  %p765_p2 = scmp.lt.s32.totalorder %s763_s26, %s756_s28 }
  0x4c   : > { %p760_p8 = pneg %p759_p1  ;;  %p766_p6 = por %p765_p2, %p764_p9 }
  0x4e   : > { %p767_p13 = pnand %p766_p6, %p760_p8 }
  0x50   : > { %770 = shalt.err (!%p767_p13)
}
  0x51   : > { %639 = dma.hbm_to_vmem [thread:$0]  (!%p994_p0), %s1052_s5, 128, %s1055_s23, %s172_s1  }
  0x52   : > { %s213_s16 = scalar_lea.vmem [#allocation11], %s987_s29  ;;  %s771_s10 = scalar_lea.hbm %s1061_s7, 128 }
  0x53   : > { %s221_s20 = sshll.u32 %s213_s16, 4  ;;  %p772_p11 = scmp.ne.s32.totalorder %s1061_s7, %s771_s10  ;;  %s222_s20 = int_to_ptr.vmem [resolvable:$true] %s221_s20 }
  0x54   : > { %s776_s22 = scalar_lea.hbm %s1190_s2, 256  ;;  %p777_p5 = scmp.lt.u32.totalorder %s1061_s7, %s1190_s2 }
  0x55   : > { %p774_p2 = pnand %p772_p11, %p1016_p4  ;;  %p778_p7 = scmp.lt.u32.totalorder %s776_s22, %s771_s10 }
  0x56   : > { %p780_p12 = scmp.lt.u32.totalorder %s771_s10, %s1061_s7 }
  0x57   : > { %p775_p3 = pneg %p774_p2  ;;  %p779_p10 = por %p778_p7, %p777_p5 }
  0x59   : > { %p781_p1 = por %p780_p12, %p779_p10 }
  0x5b   : > { %p782_p8 = pnand %p781_p1, %p775_p3 }
  0x5d   : > { %785 = shalt.err (!%p782_p8)
}
  0x5e   : > { %s786_s1 = scalar_lea.vmem %s222_s20, 128  ;;  %s891_s29 = smov [#allocation11]  }
  0x5f   : > { %p787_p9 = scmp.ne.s32.totalorder %s222_s20, %s786_s1  ;;  %s791_s5 = sshll.u32 %s891_s29, 4  ;;  %s792_s5 = int_to_ptr.vmem [resolvable:$false] %s791_s5 }
  0x60   : > { %s793_s23 = scalar_lea.vmem %s792_s5, 256  ;;  %p794_p11 = scmp.lt.s32.totalorder %s222_s20, %s792_s5 }
  0x61   : > { %p789_p6 = pnand %p787_p9, %p1016_p4  ;;  %p795_p2 = scmp.lt.s32.totalorder %s793_s23, %s786_s1 }
  0x63   : > { %p790_p13 = pneg %p789_p6  ;;  %p796_p0 = por %p795_p2, %p794_p11 }
  0x65   : > { %p797_p5 = pnand %p796_p0, %p790_p13 }
  0x67   : > { %800 = shalt.err (!%p797_p5)
}
  0x68   : > { %p1211_p7 = scmp.ne.s32.totalorder %s1205_s4, 0  ;;  %p1212_p3 = scmp.ne.s32.totalorder %s1210_s19, 0 }
  0x69   : > { %s1108_s21 = sand.u32 (!%p1212_p3), 1, %s871_s13   ;;  %p1213_p0 = scmp.ne.s32.totalorder (!%p1212_p3), %s1201_s24, 0 }
  0x6a   : > { %645 = dma.hbm_to_vmem [thread:$0]  (!%p1211_p7), %s1061_s7, 128, %s222_s20, %s1010_s11  }
  0x6b   : > { %230 = sbr.rel (%p1212_p3) target bundleno = 931 (0x3a3), region = 32  ;;  %s1111_s8 = sshll.u32 (!%p1212_p3), %s1108_s21, 3 }
  0x6c   : > { %s233_s26 = scalar_lea.sflag (!%p1212_p3), [#allocation7], %s1108_s21  ;;  %s236_s16 = scalar_lea.vmem (!%p1212_p3), [#allocation6], %s1111_s8 }
  0x72   : > { %854 = dma.done.wait (%p1213_p0), %s233_s26, 128  }
  0x73   : > { %856 = vsyncadd (%p1213_p0), %s233_s26, 4294967168  ;;  %s241_s4 = sand.u32 1, %s947_s18   ;;  %s245_s19 = scalar_lea.vmem [#allocation9], %s1111_s8 }
  0x74   : > { %s242_s11 = scalar_lea.sflag [#allocation10], %s241_s4 }
  0x75   : > { %858 = dma.done.wait (%p1213_p0), %s242_s11, 256  }
  0x76   : > { %860 = vsyncadd (%p1213_p0), %s242_s11, 4294967040  ;;  %vm294_vm0 = vcmask 261120   ;;  %v892_v0 = vmov 0.0   ;;  %vm893_vm1 = vmmov 0   ;;  %v296_v1 = vld [vmem:[%s236_s16] sm:$0xff]  ;;  %v302_v2 = vld [vmem:[%s245_s19] sm:$0xff] }
  0x77   : > { %616 = vmatprep.subr.bf16.mxu0 %v892_v0  ;;  %295 = vst.msk [vmem:[#allocation5] sm:$0xff] %vm294_vm0, %v892_v0  ;;  %618 = vmatprep.mubr.msk.bf16.mxu0 %vm893_vm1, %v892_v0  ;;  %v297_v3 = vmul.f32 0.17677669, %v296_v1  ;;  %v303_v4 = vpack.c.bf16 %v302_v2, %v302_v2  ;;  %vm299_vm2 = vcmask 257024   ;;  %vm354_vm3 = vcmask 64512   ;;  %s254_s18 = scalar_lea.vmem [#allocation11], %s1111_s8 }
  0x78   : > { %622 = vmatprep.subr.bf16.mxu1 %v892_v0  ;;  %624 = vmatprep.mubr.msk.bf16.mxu1 %vm893_vm1, %v892_v0  ;;  %v894_v13 = vmov 0   ;;  %v304_v16 = vld [vmem:[%s254_s18] sm:$0xff]  ;;  %vm388_vm4 = vcmask 1043456   ;;  %s609_s24 = sshll.u32 %s879_s15, 7  ;;  %s286_s7 = scalar_lea.vmem [#allocation12], %s1111_s8 }
  0x79   : > { %v298_v5 = vpack.c.bf16 %v297_v3, %v297_v3  ;;  %v311_v6 = vsel %vm294_vm0, %v303_v4, 0  ;;  %703 = vset.pattern.permute.xlu0 %v894_v13  ;;  %704 = vset.pattern.permute.xlu1 %v894_v13  ;;  %v305_v17 = vpack.c.bf16 %v304_v16, %v304_v16  ;;  %s463_s20 = sshll.u32 %s286_s7, 4  ;;  %s1138_s9 = scalar_lea.hbm %s1191_s3, %s609_s24  ;;  %s1140_s20 = int_to_ptr.vmem [resolvable:$true] %s463_s20 }
  0x7a   : > { %617 = vmatpush3.bf16.xpose.msra.mxu0 %v311_v6  ;;  %s449_s22 = scalar_lea.sflag [#allocation8], %s1108_s21  ;;  %s801_s28 = scalar_lea.vmem %s1140_s20, 128 }
  0x7b   : > { %300 = vst.msk [vmem:[#allocation2] sm:$0xf] %vm299_vm2, %v298_v5  ;;  %v390_v18 = vsel %vm388_vm4, %v305_v17, 0  ;;  %p802_p4 = scmp.ne.s32.totalorder %s1140_s20, %s801_s28  ;;  %p1214_p10 = scmp.ne.s32.totalorder %s1202_s25, 0 }
  0x7c   : > { %623 = vmatpush3.bf16.msra.mxu1 %v390_v18  ;;  %s895_s15 = smov [#allocation12]  }
  0x7d   : > { %p803_p12 = pnand %p802_p4, %p1214_p10  ;;  %s805_s30 = sshll.u32 %s895_s15, 4  ;;  %s806_s30 = int_to_ptr.vmem [resolvable:$false] %s805_s30 }
  0x7e   : > { %v382_v33 = vld [vmem:[#allocation5] sm:$0xff]  ;;  %s807_s1 = scalar_lea.vmem %s806_s30, 256  ;;  %p808_p8 = scmp.lt.s32.totalorder %s1140_s20, %s806_s30 }
  0x7f   : > { %p804_p1 = pneg %p803_p12  ;;  %p809_p9 = scmp.lt.s32.totalorder %s807_s1, %s801_s28 }
  0x81   : > { %p810_p6 = por %p809_p9, %p808_p8 }
  0x82   : > { %v301_v7 = vld [vmem:[#allocation2] sm:$0xf] }
  0x83   : > { %619 = vmatmul.mubr.msk.bf16.vlgmr.msra.gmra.mrb[0].mxu0 %vm294_vm0, %v301_v7  ;;  %p811_p13 = pnand %p810_p6, %p804_p1 }
 0x156   : > { %v347_v8 = vpop.f32.mrb[0].mxu0 }
 0x157   : > { %v620_v9 = vpop.f32.mrb[1].mxu0  ;;  %v355_v10 = vsel %vm354_vm3, %v347_v8, -inf }
 0x158   : > { %356 = vmax.xlane.f32.xlu0 %v355_v10  ;;  %v350_v11 = vpop.f32.mrb[2].mxu0 }
 0x159   : > { %v621_v12 = vpop.f32.mrb[3].mxu0 }
 0x1e5   : > { %v357_v14 = vpop.xlane.xlu0 %356 }
 0x1e6   : > { %v358_v15 = vmax.f32 %v357_v14, -1.7014117e+38 }
 0x1e8   : > { %364 = vperm.xlu0 %703, %v358_v15   ;;  %v359_v23 = vsub.f32 -1.7014117e+38, %v358_v15 }
 0x1ea   : > { %v360_v26 = vmul.f32 1.442695, %v359_v23 }
 0x267   : > { %v365_v19 = vpop.permute.xlu0 %364 }
 0x268   : > { %v367_v20 = vsub.f32 %v347_v8, %v365_v19 }
 0x26a   : > { %v368_v21 = vmul.f32 1.442695, %v367_v20 }
 0x26c   : > { %705 = vpow2.f32 %v368_v21 }
 0x26d   : > { %707 = vpow2.f32 %v360_v26 }
 0x276   : > { %v706_v22 = vpop.eup %705 }
 0x277   : > { %v372_v24 = vsel %vm354_vm3, %v706_v22, 0.0  ;;  %v384_v25 = vpack.c.bf16 %v706_v22, %v706_v22  ;;  %v708_v27 = vpop.eup %707 }
 0x278   : > { %373 = vadd.xlane.f32.xlu1 %v372_v24  ;;  %v371_v28 = vmul.f32 0.0, %v708_v27 }
 0x279   : > { %625 = vmatmul.mubr.msk.bf16.vlgmr.msra.gmra.mrb[0].mxu1 %vm354_vm3, %v384_v25 }
 0x289   : > { %379 = vperm.xlu1 %704, %v708_v27  }
 0x305   : > { %v374_v29 = vpop.xlane.xlu1 %373 }
 0x306   : > { %v375_v30 = vadd.f32 %v374_v29, %v371_v28 }
 0x308   : > { %709 = vrcp.f32 %v375_v30 }
 0x309   : > { %v380_v32 = vpop.permute.xlu1 %379 }
 0x30a   : > { %v383_v34 = vmul.f32 %v382_v33, %v380_v32 }
 0x312   : > { %v710_v31 = vpop.eup %709 }
 0x313   : > { %443 = vperm.xlu1 %704, %v710_v31  }
 0x34c   : > { %v426_v35 = vpop.f32.mrb[0].mxu1 }
 0x34d   : > { %v432_v36 = vadd.f32 %v426_v35, %v383_v34  ;;  %v626_v37 = vpop.f32.mrb[1].mxu1 }
 0x34e   : > { %v429_v38 = vpop.f32.mrb[2].mxu1 }
 0x34f   : > { %433 = vst.msk [vmem:[#allocation5] sm:$0xff] %vm294_vm0, %v432_v36  ;;  %v627_v39 = vpop.f32.mrb[3].mxu1 }
 0x356   : > { %v440_v41 = vld [vmem:[#allocation5] sm:$0xff] }
 0x392   : > { %v444_v40 = vpop.permute.xlu1 %443 }
 0x393   : > { %v446_v42 = vmul.f32 %v444_v40, %v440_v41 }
 0x395   : > { %447 = vst.msk [vmem:[%s286_s7] sm:$0xff] %vm294_vm0, %v446_v42 }
 0x396   : > { %814 = shalt.err (!%p811_p13)
}
 0x397   : > { %s815_s29 = scalar_lea.hbm %s1138_s9, 128  ;;  %s819_s21 = scalar_lea.hbm %s1191_s3, 256 }
 0x398   : > { %p816_p11 = scmp.ne.s32.totalorder %s1138_s9, %s815_s29  ;;  %p820_p7 = scmp.lt.u32.totalorder %s1138_s9, %s1191_s3 }
 0x399   : > { %p821_p3 = scmp.lt.u32.totalorder %s819_s21, %s815_s29  ;;  %p823_p4 = scmp.lt.u32.totalorder %s815_s29, %s1138_s9 }
 0x39a   : > { %p817_p2 = pnand %p816_p11, %p1214_p10 }
 0x39b   : > { %p822_p0 = por %p821_p3, %p820_p7 }
 0x39c   : > { %p818_p5 = pneg %p817_p2 }
 0x39d   : > { %p824_p12 = por %p823_p4, %p822_p0 }
 0x39f   : > { %p825_p1 = pnand %p824_p12, %p818_p5 }
 0x3a1   : > { %828 = shalt.err (!%p825_p1)
}
 0x3a2   : > { %634 = dma.vmem_to_hbm [thread:$0]  (%p1214_p10), %s1140_s20, 128, %s1138_s9, %s449_s22  }
 0x3a3 PF: > { %s475_s16 = sand.u32 1, %s867_s12   ;;  %p1215_p8 = scmp.ne.s32.totalorder %s1204_s27, 0 }
 0x3a4   : > { %p1216_p9 = scmp.ge.s32.totalorder %s887_s17, 2  ;;  %s476_s4 = scalar_lea.sflag [#allocation8], %s475_s16 }
 0x3a6   : > { %p647_p6 = pnand %p1216_p9, %p1215_p8 }
 0x3a8   : > { %862 = dma.done.wait (!%p647_p6), %s476_s4, 128  }
 0x3a9   : > { %864 = vsyncadd (!%p647_p6), %s476_s4, 4294967168  ;;  %s22_s17 = sadd.s32 1, %s887_s17   ;;  %s1217_s25 = sld [smem:[#allocation18_spill]] }
 0x3aa   : > { %p19_p13 = scmp.ge.s32.totalorder %s22_s17, 4   ;;  %s1218_s15 = sld [smem:[#allocation16_spill]] }
 0x3ab   : > { %s1219_s16 = sld [smem:[#allocation17_spill]]  ;;  %s1220_s12 = smov %s871_s13 }
 0x3ac   : > { %s1221_s13 = smov %s875_s14  ;;  %21 = sbr.rel (!%p19_p13) target bundleno = 10 (0xa), region = 109 }
 0x3af   : > { %s1222_s14 = smov %s1217_s25 }
 0x3b3   :  { %481 = vsyncpa [#allocation7], 1 }
 0x3b4   :  { %483 = vsyncpa [#allocation7 + $0x1], 1 }
 0x3b5   :  { %484 = vsyncpa [#allocation10], 1 }
 0x3b6   :  { %486 = vsyncpa [#allocation10 + $0x1], 1 }
 0x3b7   :  { %487 = vsyncpa [#allocation8], 1 }
 0x3b8   :  { %489 = vsyncpa [#allocation8 + $0x1], 1 }

</bundles_post_ra>
